<compile_context>
chip_gen: v5e
topology: v5e:2x2
jax: 0.10.0
libtpu: 0.0.40
codegen_flags: <defaults>
</compile_context>

<pallas_src>
import jax
import jax.numpy as jnp
from jax.experimental import pallas as pl
from jax.experimental.pallas import tpu as pltpu

LANE = 128

# Per-operand tile size cap for the large-input (tiled) path: 2 MiB of f32
# (4096 rows x 128 lanes) amortizes the ~0.35 us/step grid overhead and sits
# at the measured ~85-86% HBM-roofline sweet spot for tiled f32 adds.
MAX_TILE_BYTES = 2 * 1024 * 1024
# Below this per-operand size, use a single full-array block (no grid).
SINGLE_BLOCK_MAX_BYTES = 2 * 1024 * 1024
# Only shard across TensorCores (megacore) when each TC gets >= this much.
MEGACORE_MIN_BYTES_PER_TC = 4 * 1024 * 1024


def _ceil_div(a: int, b: int) -> int:
    return -(-a // b)


def _sublane(dtype) -> int:
    """Packed sublane height per vreg tile: f32 -> 8, bf16 -> 16, int8/fp8 -> 32."""
    bits = jnp.dtype(dtype).itemsize * 8
    return max(8, 256 // bits)


def _add_kernel(a_ref, b_ref, o_ref):
    o_ref[...] = a_ref[...] + b_ref[...]


def pallas_add(a: jax.Array, b: jax.Array) -> jax.Array:
    assert a.shape == b.shape and a.dtype == b.dtype
    orig_shape = a.shape
    n = a.size
    itemsize = jnp.dtype(a.dtype).itemsize

    a_flat = a.reshape(-1)
    b_flat = b.reshape(-1)

    # Lane-dense slab: rows of 128 lanes. Pad only a sub-128-element tail when
    # n is not an exact multiple of 128 (the module's shape needs NO padding).
    rows = _ceil_div(n, LANE)
    flat_pad = rows * LANE - n
    if flat_pad:
        a_flat = jnp.pad(a_flat, (0, flat_pad))
        b_flat = jnp.pad(b_flat, (0, flat_pad))

    per_operand_bytes = rows * LANE * itemsize

    if per_operand_bytes <= SINGLE_BLOCK_MAX_BYTES:
        # Small / medium inputs: one full-array block, no grid, no row padding,
        # no masked stores. 147x128 f32 is ~75 KiB/operand -> trivially fits
        # VMEM on every generation (v5e/v6e 128 MiB, v7x 64 MiB).
        a2 = a_flat.reshape(rows, LANE)
        b2 = b_flat.reshape(rows, LANE)
        out2 = pl.pallas_call(
            _add_kernel,
            out_shape=jax.ShapeDtypeStruct((rows, LANE), a.dtype),
        )(a2, b2)
    else:
        # Large-input scaling path: tiled, double-buffered, lane-dense stores.
        sub = _sublane(a.dtype)
        max_tile_rows = max(sub, MAX_TILE_BYTES // (LANE * itemsize))

        # Megacore sharding only when each TC gets meaningful work.
        if per_operand_bytes >= 2 * MEGACORE_MIN_BYTES_PER_TC:
            target_rows = _ceil_div(rows, 2)
        else:
            target_rows = rows

        tile_rows = min(max_tile_rows, target_rows)
        tile_rows = max(sub, (tile_rows // sub) * sub)  # sublane-aligned

        grid_n = _ceil_div(rows, tile_rows)
        padded_rows = grid_n * tile_rows
        row_pad = padded_rows - rows
        if row_pad:
            a_flat = jnp.pad(a_flat, (0, row_pad * LANE))
            b_flat = jnp.pad(b_flat, (0, row_pad * LANE))
        a2 = a_flat.reshape(padded_rows, LANE)
        b2 = b_flat.reshape(padded_rows, LANE)

        # VMEM budget: 2 inputs + 1 output, double-buffered, plus headroom.
        tile_bytes = tile_rows * LANE * itemsize
        vmem_needed = 3 * 2 * tile_bytes
        vmem_limit = int(min(48 << 20, max(vmem_needed + (4 << 20), 16 << 20)))

        out2 = pl.pallas_call(
            _add_kernel,
            out_shape=jax.ShapeDtypeStruct((padded_rows, LANE), a.dtype),
            grid_spec=pltpu.PrefetchScalarGridSpec(
                num_scalar_prefetch=0,
                grid=(grid_n,),
                in_specs=[
                    pl.BlockSpec((tile_rows, LANE), lambda i: (i, 0)),
                    pl.BlockSpec((tile_rows, LANE), lambda i: (i, 0)),
                ],
                out_specs=pl.BlockSpec((tile_rows, LANE), lambda i: (i, 0)),
            ),
            compiler_params=pltpu.CompilerParams(
                dimension_semantics=("parallel",),
                vmem_limit_bytes=vmem_limit,
            ),
        )(a2, b2)

    out_flat = out2.reshape(-1)
    if out_flat.size != n:
        out_flat = out_flat[:n]
    return out_flat.reshape(orig_shape)


class MPallas:
    """Equivalent of the PyTorch module M: forward(x782, x767) = x782 + x767."""

    def __init__(self):
        # jit so the reshape plumbing fuses with the pallas_call (no separate
        # eagerly-dispatched XLA ops / HBM copies around the kernel).
        self._fn = jax.jit(pallas_add)

    def __call__(self, x782, x767):
        return self._fn(x782, x767)


if __name__ == "__main__":
    key = jax.random.PRNGKey(0)
    k1, k2 = jax.random.split(key)
    # Shapes from the module's forward: (1, 384, 7, 7), NCHW, float32.
    x767 = jax.random.normal(k1, (1, 384, 7, 7), dtype=jnp.float32)
    x782 = jax.random.normal(k2, (1, 384, 7, 7), dtype=jnp.float32)

    m = MPallas()
    out = m(x782, x767)
    jax.block_until_ready(out)

    # Correctness check against plain JAX reference.
    ref = x782 + x767
    assert out.shape == ref.shape and out.dtype == ref.dtype
    assert jnp.allclose(out, ref), "mismatch vs reference add"

    print("KERNEL_OK")
</pallas_src>

<mosaic_0001>
module attributes {stable_mosaic.version = 11 : i64} {
  func.func @_add_kernel(%arg0: memref<147x128xf32, #tpu.memory_space<vmem>>, %arg1: memref<147x128xf32, #tpu.memory_space<vmem>>, %arg2: memref<147x128xf32, #tpu.memory_space<vmem>>) attributes {dimension_semantics = [], scalar_prefetch = 0 : i64, scratch_operands = 0 : i64, tpu.core_type = #tpu.core_type<tc>} {
    %c0 = arith.constant 0 : index
    %c0_0 = arith.constant 0 : index
    %0 = vector.load %arg0[%c0, %c0_0] : memref<147x128xf32, #tpu.memory_space<vmem>>, vector<147x128xf32>
    %c0_1 = arith.constant 0 : index
    %c0_2 = arith.constant 0 : index
    %1 = vector.load %arg1[%c0_1, %c0_2] : memref<147x128xf32, #tpu.memory_space<vmem>>, vector<147x128xf32>
    %2 = arith.addf %0, %1 : vector<147x128xf32>
    %c0_3 = arith.constant 0 : index
    %c0_4 = arith.constant 0 : index
    %3 = vector.load %arg2[%c0_3, %c0_4] : memref<147x128xf32, #tpu.memory_space<vmem>>, vector<147x128xf32>
    tpu.vector_store %arg2[%c0_3, %c0_4], %2 {strides = array<i32>} : memref<147x128xf32, #tpu.memory_space<vmem>>, vector<147x128xf32>,
    return
  }
}

</mosaic_0001>

<bundles_post_ra>
// kernel: pallas_add.1
= control target key start
LH: loop header
LB: loop body
LE: loop exit
PB: predicated region body
PF: predicated region fallthrough
CT: control target
= control target key end

     0   :  { %s277_s0 = inlined_call_operand.vmem [shape: f32[147,128], index: 0, kind: input, shape index: {}]   ;;  %s278_s1 = inlined_call_operand.vmem [shape: f32[147,128], index: 1, kind: input, shape index: {}]   ;;  %s279_s2 = inlined_call_operand.vmem [shape: f32[147,128], index: 2, kind: output, shape index: {}]  }
   0x1   :  { %v11_v0 = vld [vmem:[%s277_s0] sm:$0xff]  ;;  %v12_v2 = vld [vmem:[%s277_s0 + $0x8] sm:$0xff]  ;;  %v13_v5 = vld [vmem:[%s277_s0 + $0x10] sm:$0xff] }
   0x2   :  { %v30_v1 = vld [vmem:[%s278_s1] sm:$0xff]  ;;  %v31_v4 = vld [vmem:[%s278_s1 + $0x8] sm:$0xff]  ;;  %v32_v6 = vld [vmem:[%s278_s1 + $0x10] sm:$0xff] }
   0x3   :  { %v49_v3 = vadd.f32 %v30_v1, %v11_v0  ;;  %v50_v7 = vadd.f32 %v31_v4, %v12_v2  ;;  %v51_v8 = vadd.f32 %v32_v6, %v13_v5  ;;  %v14_v9 = vld [vmem:[%s277_s0 + $0x18] sm:$0xff]  ;;  %v15_v11 = vld [vmem:[%s277_s0 + $0x20] sm:$0xff]  ;;  %v16_v14 = vld [vmem:[%s277_s0 + $0x28] sm:$0xff] }
   0x4   :  { %v33_v10 = vld [vmem:[%s278_s1 + $0x18] sm:$0xff]  ;;  %v34_v13 = vld [vmem:[%s278_s1 + $0x20] sm:$0xff]  ;;  %v35_v15 = vld [vmem:[%s278_s1 + $0x28] sm:$0xff] }
   0x5   :  { %68 = vst [vmem:[%s279_s2] sm:$0xff] %v49_v3  ;;  %v52_v12 = vadd.f32 %v33_v10, %v14_v9  ;;  %v53_v16 = vadd.f32 %v34_v13, %v15_v11  ;;  %v54_v17 = vadd.f32 %v35_v15, %v16_v14  ;;  %v17_v18 = vld [vmem:[%s277_s0 + $0x30] sm:$0xff]  ;;  %v18_v20 = vld [vmem:[%s277_s0 + $0x38] sm:$0xff]  ;;  %v19_v23 = vld [vmem:[%s277_s0 + $0x40] sm:$0xff] }
   0x6   :  { %69 = vst [vmem:[%s279_s2 + $0x8] sm:$0xff] %v50_v7  ;;  %v36_v19 = vld [vmem:[%s278_s1 + $0x30] sm:$0xff]  ;;  %v37_v22 = vld [vmem:[%s278_s1 + $0x38] sm:$0xff]  ;;  %v38_v24 = vld [vmem:[%s278_s1 + $0x40] sm:$0xff] }
   0x7   :  { %70 = vst [vmem:[%s279_s2 + $0x10] sm:$0xff] %v51_v8  ;;  %v55_v21 = vadd.f32 %v36_v19, %v17_v18  ;;  %v56_v25 = vadd.f32 %v37_v22, %v18_v20  ;;  %v20_v26 = vld [vmem:[%s277_s0 + $0x48] sm:$0xff]  ;;  %v21_v28 = vld [vmem:[%s277_s0 + $0x50] sm:$0xff]  ;;  %v57_v29 = vadd.f32 %v38_v24, %v19_v23  ;;  %v22_v31 = vld [vmem:[%s277_s0 + $0x58] sm:$0xff] }
   0x8   :  { %71 = vst [vmem:[%s279_s2 + $0x18] sm:$0xff] %v52_v12  ;;  %v39_v27 = vld [vmem:[%s278_s1 + $0x48] sm:$0xff]  ;;  %v40_v30 = vld [vmem:[%s278_s1 + $0x50] sm:$0xff]  ;;  %v41_v32 = vld [vmem:[%s278_s1 + $0x58] sm:$0xff] }
   0x9   :  { %72 = vst [vmem:[%s279_s2 + $0x20] sm:$0xff] %v53_v16  ;;  %v58_v33 = vadd.f32 %v39_v27, %v20_v26  ;;  %v23_v34 = vld [vmem:[%s277_s0 + $0x60] sm:$0xff]  ;;  %v59_v36 = vadd.f32 %v40_v30, %v21_v28  ;;  %v24_v37 = vld [vmem:[%s277_s0 + $0x68] sm:$0xff]  ;;  %v60_v39 = vadd.f32 %v41_v32, %v22_v31  ;;  %v25_v40 = vld [vmem:[%s277_s0 + $0x70] sm:$0xff] }
   0xa   :  { %73 = vst [vmem:[%s279_s2 + $0x28] sm:$0xff] %v54_v17  ;;  %v42_v35 = vld [vmem:[%s278_s1 + $0x60] sm:$0xff]  ;;  %v43_v38 = vld [vmem:[%s278_s1 + $0x68] sm:$0xff]  ;;  %v44_v41 = vld [vmem:[%s278_s1 + $0x70] sm:$0xff] }
   0xb   :  { %74 = vst [vmem:[%s279_s2 + $0x30] sm:$0xff] %v55_v21  ;;  %v61_v42 = vadd.f32 %v42_v35, %v23_v34  ;;  %v26_v43 = vld [vmem:[%s277_s0 + $0x78] sm:$0xff]  ;;  %v62_v45 = vadd.f32 %v43_v38, %v24_v37  ;;  %v27_v46 = vld [vmem:[%s277_s0 + $0x80] sm:$0xff]  ;;  %v63_v48 = vadd.f32 %v44_v41, %v25_v40  ;;  %v28_v49 = vld [vmem:[%s277_s0 + $0x88] sm:$0xff] }
   0xc   :  { %75 = vst [vmem:[%s279_s2 + $0x38] sm:$0xff] %v56_v25  ;;  %v45_v44 = vld [vmem:[%s278_s1 + $0x78] sm:$0xff]  ;;  %v46_v47 = vld [vmem:[%s278_s1 + $0x80] sm:$0xff]  ;;  %v47_v50 = vld [vmem:[%s278_s1 + $0x88] sm:$0xff] }
   0xd   :  { %76 = vst [vmem:[%s279_s2 + $0x40] sm:$0xff] %v57_v29  ;;  %v64_v51 = vadd.f32 %v45_v44, %v26_v43  ;;  %v29_v52 = vld [vmem:[%s277_s0 + $0x90] sm:$0x7]  ;;  %v65_v54 = vadd.f32 %v46_v47, %v27_v46  ;;  %v66_v55 = vadd.f32 %v47_v50, %v28_v49 }
   0xe   :  { %77 = vst [vmem:[%s279_s2 + $0x48] sm:$0xff] %v58_v33  ;;  %v48_v53 = vld [vmem:[%s278_s1 + $0x90] sm:$0x7] }
   0xf   :  { %78 = vst [vmem:[%s279_s2 + $0x50] sm:$0xff] %v59_v36  ;;  %v67_v56 = vadd.f32 %v48_v53, %v29_v52 }
  0x10   :  { %79 = vst [vmem:[%s279_s2 + $0x58] sm:$0xff] %v60_v39 }
  0x11   :  { %80 = vst [vmem:[%s279_s2 + $0x60] sm:$0xff] %v61_v42 }
  0x12   :  { %81 = vst [vmem:[%s279_s2 + $0x68] sm:$0xff] %v62_v45 }
  0x13   :  { %82 = vst [vmem:[%s279_s2 + $0x70] sm:$0xff] %v63_v48 }
  0x14   :  { %83 = vst [vmem:[%s279_s2 + $0x78] sm:$0xff] %v64_v51 }
  0x15   :  { %84 = vst [vmem:[%s279_s2 + $0x80] sm:$0xff] %v65_v54 }
  0x16   :  { %85 = vst [vmem:[%s279_s2 + $0x88] sm:$0xff] %v66_v55 }
  0x17   :  { %86 = vst [vmem:[%s279_s2 + $0x90] sm:$0x7] %v67_v56 }

</bundles_post_ra>
